<compile_context>
chip_gen: v7x
topology: tpu7x:2x2x1
jax: 0.10.0
libtpu: 0.0.40
codegen_flags: <defaults>
</compile_context>

<pallas_src>
import math

import jax
import jax.numpy as jnp
from jax.experimental import pallas as pl
from jax.experimental.pallas import tpu as pltpu


# ----------------------------- Pallas kernel ------------------------------ #

def transformer_block_kernel(
    q_heads_ref,     # (1, H, TQ, D) bf16 : query rows of the head-split value
    kv_heads_ref,    # (1, H, L,  D) bf16 : full head-split value (keys & vals)
    resid_ref,       # (1, TQ, E)    f32  : `query` input (residual path)
    maskz_ref,       # (1, TQ, L)    int8 : 1 where mask == 0 (masked out)
    wfc_h_ref,       # (H, D, E)     bf16 : fc_out weight, head-split
    bfc_ref,         # (1, E)        f32
    g1_ref, bt1_ref,                 # (1, E) f32 : LayerNorm1 params
    w1_t_ref,        # (E, FE)       bf16
    b1_ref,          # (1, FE)       f32
    w2_t_ref,        # (FE, E)       bf16
    b2_ref,          # (1, E)        f32
    g2_ref, bt2_ref,                 # (1, E) f32 : LayerNorm2 params
    out_ref,         # (1, TQ, E)    f32
):
    E = resid_ref.shape[-1]
    inv_sqrt_e = jnp.float32(1.0 / math.sqrt(E))

    qh = q_heads_ref[0]            # (H, TQ, D) bf16
    kv = kv_heads_ref[0]           # (H, L,  D) bf16
    masked = maskz_ref[0] != 0     # (TQ, L) — computed once, shared by heads

    # ---- SelfAttention (all heads batched) ----------------------------- #
    # energy = einsum('nqhd,nkhd->nhqk'); queries == keys == reshaped values.
    energy = jnp.einsum("hqd,hkd->hqk", qh, kv,
                        preferred_element_type=jnp.float32)     # (H, TQ, L)
    energy = jnp.where(masked[None, :, :], jnp.float32(-1e20), energy)
    logits = energy * inv_sqrt_e                                 # mask BEFORE scale

    m = jnp.max(logits, axis=-1, keepdims=True)
    p = jnp.exp(logits - m)
    denom = jnp.sum(p, axis=-1, keepdims=True)
    attn = p * pl.reciprocal(denom, approx=True)                 # (H, TQ, L)

    ctx = jnp.einsum("hqk,hkd->hqd", attn.astype(jnp.bfloat16), kv,
                     preferred_element_type=jnp.float32)         # (H, TQ, D)

    # fc_out fused across heads: sum_h ctx_h @ Wfc_h   (no concat relayout)
    per_head = jnp.einsum("hqd,hde->hqe", ctx.astype(jnp.bfloat16),
                          wfc_h_ref[...],
                          preferred_element_type=jnp.float32)    # (H, TQ, E)
    attn_out = jnp.sum(per_head, axis=0) + bfc_ref[0]            # (TQ, E)

    # ---- residual + LayerNorm 1 ----------------------------------------- #
    x1 = attn_out + resid_ref[0]
    mu1 = jnp.mean(x1, axis=-1, keepdims=True)
    var1 = jnp.mean((x1 - mu1) ** 2, axis=-1, keepdims=True)
    x1n = (x1 - mu1) * jax.lax.rsqrt(var1 + 1e-5) * g1_ref[0] + bt1_ref[0]

    # ---- feed-forward: Linear -> ReLU -> Linear (bf16 MXU, f32 acc) ------ #
    hmid = jnp.dot(x1n.astype(jnp.bfloat16), w1_t_ref[...],
                   preferred_element_type=jnp.float32) + b1_ref[0]
    hmid = jnp.maximum(hmid, 0.0)
    ff = jnp.dot(hmid.astype(jnp.bfloat16), w2_t_ref[...],
                 preferred_element_type=jnp.float32) + b2_ref[0]

    # ---- residual + LayerNorm 2 ------------------------------------------ #
    x2 = ff + x1n
    mu2 = jnp.mean(x2, axis=-1, keepdims=True)
    var2 = jnp.mean((x2 - mu2) ** 2, axis=-1, keepdims=True)
    x2n = (x2 - mu2) * jax.lax.rsqrt(var2 + 1e-5) * g2_ref[0] + bt2_ref[0]

    out_ref[0] = x2n.astype(out_ref.dtype)


# ------------------------------ wrapper ------------------------------------ #

def transformer_block(value, key, query, mask, params, *, heads, tq=None):
    """value/key/query: (N, L, E) f32; mask: (N, 1, L, L).

    NOTE: `key` is unused by the reference forward (only its shape), kept for
    signature parity.
    """
    del key
    N, L, E = query.shape
    D = E // heads
    FE = params["w1"].shape[0]

    # Query-row tile.  At real sizes make this generation dependent
    # (~256 for v7x / 64 MiB VMEM; 512+ for v5e/v6e / 128 MiB VMEM).
    if tq is None:
        tq = min(L, 256)
    assert L % tq == 0, "sequence length must be a multiple of the row tile"
    n_qt = L // tq

    # Head-split view of `value` (used for Q, K and V per the reference),
    # pre-cast to bf16 so the MXU runs at its native bf16 rate.
    v_heads = jnp.transpose(
        value.reshape(N, L, heads, D), (0, 2, 1, 3)).astype(jnp.bfloat16)

    # `mask == 0` evaluated once at full precision, shipped as int8 bits.
    mask_zero = (mask.reshape(N, L, L) == 0).astype(jnp.int8)

    # Torch-layout weights (out, in) -> (in, out); bf16 MXU operands.
    wfc_h = params["wfc"].T.reshape(heads, D, E).astype(jnp.bfloat16)
    w1_t = params["w1"].T.astype(jnp.bfloat16)          # (E, FE)
    w2_t = params["w2"].T.astype(jnp.bfloat16)          # (FE, E)
    f32 = jnp.float32
    bfc = params["bfc"].reshape(1, E).astype(f32)
    b1 = params["b1"].reshape(1, FE).astype(f32)
    b2 = params["b2"].reshape(1, E).astype(f32)
    g1 = params["g1"].reshape(1, E).astype(f32)
    bt1 = params["bt1"].reshape(1, E).astype(f32)
    g2 = params["g2"].reshape(1, E).astype(f32)
    bt2 = params["bt2"].reshape(1, E).astype(f32)

    rep2 = lambda n, q: (0, 0)       # parameters: same block every grid step
    rep3 = lambda n, q: (0, 0, 0)

    grid_spec = pltpu.PrefetchScalarGridSpec(
        num_scalar_prefetch=0,
        grid=(N, n_qt),
        in_specs=[
            pl.BlockSpec((1, heads, tq, D), lambda n, q: (n, 0, q, 0)),  # q rows
            pl.BlockSpec((1, heads, L, D), lambda n, q: (n, 0, 0, 0)),   # keys/vals
            pl.BlockSpec((1, tq, E), lambda n, q: (n, q, 0)),            # residual
            pl.BlockSpec((1, tq, L), lambda n, q: (n, q, 0)),            # mask bits
            pl.BlockSpec(wfc_h.shape, rep3),
            pl.BlockSpec(bfc.shape, rep2),
            pl.BlockSpec(g1.shape, rep2),
            pl.BlockSpec(bt1.shape, rep2),
            pl.BlockSpec(w1_t.shape, rep2),
            pl.BlockSpec(b1.shape, rep2),
            pl.BlockSpec(w2_t.shape, rep2),
            pl.BlockSpec(b2.shape, rep2),
            pl.BlockSpec(g2.shape, rep2),
            pl.BlockSpec(bt2.shape, rep2),
        ],
        out_specs=pl.BlockSpec((1, tq, E), lambda n, q: (n, q, 0)),
    )

    # Explicit VMEM budget: double-buffered activation blocks + resident
    # weights, with headroom, clamped to a value valid on every generation.
    act_bytes = 2 * (heads * tq * D * 2 + heads * L * D * 2
                     + tq * E * 4 + tq * L * 1 + tq * E * 4)
    wgt_bytes = (heads * D * E + E * FE + FE * E) * 2 + (6 * E + FE) * 4
    vmem_limit = int(min(max(4 * (act_bytes + wgt_bytes), 16 * 1024 * 1024),
                         64 * 1024 * 1024))

    return pl.pallas_call(
        transformer_block_kernel,
        out_shape=jax.ShapeDtypeStruct((N, L, E), jnp.float32),
        grid_spec=grid_spec,
        compiler_params=pltpu.CompilerParams(
            dimension_semantics=("parallel", "parallel"),
            vmem_limit_bytes=vmem_limit),
    )(v_heads, v_heads, query, mask_zero, wfc_h, bfc, g1, bt1,
      w1_t, b1, w2_t, b2, g2, bt2)


# --------------------------- pure-JAX reference ----------------------------- #

def reference_forward(value, key, query, mask, params, *, heads):
    del key
    N, L, E = query.shape
    D = E // heads
    v = value.reshape(N, L, heads, D)
    energy = jnp.einsum("nqhd,nkhd->nhqk", v, v)
    energy = jnp.where(mask == 0, -1e20, energy)
    attn = jax.nn.softmax(energy / (E ** 0.5), axis=3)
    out = jnp.einsum("nhql,nlhd->nqhd", attn, v).reshape(N, L, E)
    out = out @ params["wfc"].T + params["bfc"]

    def ln(x, g, b):
        mu = x.mean(-1, keepdims=True)
        var = ((x - mu) ** 2).mean(-1, keepdims=True)
        return (x - mu) / jnp.sqrt(var + 1e-5) * g + b

    x = ln(out + query, params["g1"], params["bt1"])
    h = jnp.maximum(x @ params["w1"].T + params["b1"], 0.0)
    ff = h @ params["w2"].T + params["b2"]
    return ln(ff + x, params["g2"], params["bt2"])


# --------------------------------- main ------------------------------------ #

if __name__ == "__main__":
    N, L, E = 2, 8, 32
    HEADS = 4
    FORWARD_EXPANSION = 4
    FE = FORWARD_EXPANSION * E

    root = jax.random.PRNGKey(0)
    ks = jax.random.split(root, 12)

    # Deterministic synthetic parameters (torch weight layout: (out, in)).
    params = {
        "wfc": 0.05 * jax.random.normal(ks[0], (E, E), jnp.float32),
        "bfc": 0.05 * jax.random.normal(ks[1], (E,), jnp.float32),
        "g1": 1.0 + 0.05 * jax.random.normal(ks[2], (E,), jnp.float32),
        "bt1": 0.05 * jax.random.normal(ks[3], (E,), jnp.float32),
        "w1": 0.05 * jax.random.normal(ks[4], (FE, E), jnp.float32),
        "b1": 0.05 * jax.random.normal(ks[5], (FE,), jnp.float32),
        "w2": 0.05 * jax.random.normal(ks[6], (E, FE), jnp.float32),
        "b2": 0.05 * jax.random.normal(ks[7], (E,), jnp.float32),
        "g2": 1.0 + 0.05 * jax.random.normal(ks[8], (E,), jnp.float32),
        "bt2": 0.05 * jax.random.normal(ks[9], (E,), jnp.float32),
    }

    value = jax.random.normal(ks[10], (N, L, E), jnp.float32)
    key_t = value  # unused by the forward math (reference bug), shape only
    query = jax.random.normal(ks[11], (N, L, E), jnp.float32)
    mask = jnp.ones((N, 1, L, L), jnp.float32)  # no positions masked

    out = transformer_block(value, key_t, query, mask, params, heads=HEADS)
    out = jax.block_until_ready(out)

    ref = reference_forward(value, key_t, query, mask, params, heads=HEADS)
    assert out.shape == (N, L, E)
    # bf16 MXU operands (f32 accumulation) -> compare at bf16-level tolerance.
    max_err = float(jnp.max(jnp.abs(out - ref)))
    assert jnp.allclose(out, ref, atol=3e-2, rtol=3e-2), max_err

    print("KERNEL_OK")
</pallas_src>

<mosaic_0001>
module attributes {stable_mosaic.version = 11 : i64} {
  func.func @transformer_block_kernel(%arg0: i32, %arg1: i32, %arg2: memref<1x4x8x8xbf16, #tpu.memory_space<vmem>>, %arg3: memref<1x4x8x8xbf16, #tpu.memory_space<vmem>>, %arg4: memref<1x8x32xf32, #tpu.memory_space<vmem>>, %arg5: memref<1x8x8xi8, #tpu.memory_space<vmem>>, %arg6: memref<4x8x32xbf16, #tpu.memory_space<vmem>>, %arg7: memref<1x32xf32, #tpu.memory_space<vmem>>, %arg8: memref<1x32xf32, #tpu.memory_space<vmem>>, %arg9: memref<1x32xf32, #tpu.memory_space<vmem>>, %arg10: memref<32x128xbf16, #tpu.memory_space<vmem>>, %arg11: memref<1x128xf32, #tpu.memory_space<vmem>>, %arg12: memref<128x32xbf16, #tpu.memory_space<vmem>>, %arg13: memref<1x32xf32, #tpu.memory_space<vmem>>, %arg14: memref<1x32xf32, #tpu.memory_space<vmem>>, %arg15: memref<1x32xf32, #tpu.memory_space<vmem>>, %arg16: memref<1x8x32xf32, #tpu.memory_space<vmem>>) attributes {dimension_semantics = [#tpu.dimension_semantics<parallel>, #tpu.dimension_semantics<parallel>], iteration_bounds = array<i64: 2, 1>, scalar_prefetch = 0 : i64, scratch_operands = 0 : i64, tpu.core_type = #tpu.core_type<tc>, window_params = [{transform_indices = @transform_0, window_bounds = array<i64: 1, 4, 8, 8>}, {transform_indices = @transform_1, window_bounds = array<i64: 1, 4, 8, 8>}, {transform_indices = @transform_2, window_bounds = array<i64: 1, 8, 32>}, {transform_indices = @transform_3, window_bounds = array<i64: 1, 8, 8>}, {pipeline_mode = #tpu.pipeline_mode<synchronous>, transform_indices = @transform_4, window_bounds = array<i64: 4, 8, 32>}, {pipeline_mode = #tpu.pipeline_mode<synchronous>, transform_indices = @transform_5, window_bounds = array<i64: 1, 32>}, {pipeline_mode = #tpu.pipeline_mode<synchronous>, transform_indices = @transform_6, window_bounds = array<i64: 1, 32>}, {pipeline_mode = #tpu.pipeline_mode<synchronous>, transform_indices = @transform_7, window_bounds = array<i64: 1, 32>}, {pipeline_mode = #tpu.pipeline_mode<synchronous>, transform_indices = @transform_8, window_bounds = array<i64: 32, 128>}, {pipeline_mode = #tpu.pipeline_mode<synchronous>, transform_indices = @transform_9, window_bounds = array<i64: 1, 128>}, {pipeline_mode = #tpu.pipeline_mode<synchronous>, transform_indices = @transform_10, window_bounds = array<i64: 128, 32>}, {pipeline_mode = #tpu.pipeline_mode<synchronous>, transform_indices = @transform_11, window_bounds = array<i64: 1, 32>}, {pipeline_mode = #tpu.pipeline_mode<synchronous>, transform_indices = @transform_12, window_bounds = array<i64: 1, 32>}, {pipeline_mode = #tpu.pipeline_mode<synchronous>, transform_indices = @transform_13, window_bounds = array<i64: 1, 32>}, {transform_indices = @transform_14, window_bounds = array<i64: 1, 8, 32>}]} {
    %c0 = arith.constant 0 : index
    %c0_0 = arith.constant 0 : index
    %c0_1 = arith.constant 0 : index
    %c0_2 = arith.constant 0 : index
    %0 = vector.load %arg2[%c0, %c0_0, %c0_1, %c0_2] : memref<1x4x8x8xbf16, #tpu.memory_space<vmem>>, vector<1x4x8x8xbf16>
    %1 = vector.shape_cast %0 : vector<1x4x8x8xbf16> to vector<4x8x8xbf16>
    %c0_3 = arith.constant 0 : index
    %c0_4 = arith.constant 0 : index
    %c0_5 = arith.constant 0 : index
    %c0_6 = arith.constant 0 : index
    %2 = vector.load %arg3[%c0_3, %c0_4, %c0_5, %c0_6] : memref<1x4x8x8xbf16, #tpu.memory_space<vmem>>, vector<1x4x8x8xbf16>
    %3 = vector.shape_cast %2 : vector<1x4x8x8xbf16> to vector<4x8x8xbf16>
    %c0_7 = arith.constant 0 : index
    %c0_8 = arith.constant 0 : index
    %c0_9 = arith.constant 0 : index
    %4 = vector.load %arg5[%c0_7, %c0_8, %c0_9] : memref<1x8x8xi8, #tpu.memory_space<vmem>>, vector<1x8x8xi8>
    %5 = vector.shape_cast %4 : vector<1x8x8xi8> to vector<8x8xi8>
    %c0_i8 = arith.constant 0 : i8
    %6 = vector.broadcast %c0_i8 : i8 to vector<8x8xi8>
    %7 = arith.cmpi ne, %5, %6 : vector<8x8xi8>
    "tpu.trace_start"() <{level = 10 : i32, message = "hqd,hkd->hqk"}> : () -> ()
    %cst = arith.constant dense<0.000000e+00> : vector<4x8x8xf32>
    %8 = tpu.matmul %1, %3, %cst {dimension_numbers = #tpu.dot_dimension_numbers<[2], [2], [1], [1], [0, 0, 0, 1, 1, 1], [0], [0]>} : vector<4x8x8xbf16>, vector<4x8x8xbf16>, vector<4x8x8xf32> -> vector<4x8x8xf32>
    "tpu.trace_stop"() : () -> ()
    %9 = vector.shape_cast %7 : vector<8x8xi1> to vector<1x8x8xi1>
    %cst_10 = arith.constant -1.000000e+20 : f32
    %10 = vector.shape_cast %9 : vector<1x8x8xi1> to vector<1x8x8xi1>
    %11 = vector.broadcast %10 : vector<1x8x8xi1> to vector<4x8x8xi1>
    %12 = vector.broadcast %cst_10 : f32 to vector<4x8x8xf32>
    %13 = arith.select %11, %12, %8 : vector<4x8x8xi1>, vector<4x8x8xf32>
    %cst_11 = arith.constant 0.176776692 : f32
    %14 = vector.broadcast %cst_11 : f32 to vector<4x8x8xf32>
    %15 = arith.mulf %13, %14 : vector<4x8x8xf32>
    %cst_12 = arith.constant dense<0xFF800000> : vector<4x8xf32>
    %16 = vector.multi_reduction <maximumf>, %15, %cst_12 [2] : vector<4x8x8xf32> to vector<4x8xf32>
    %17 = vector.shape_cast %16 : vector<4x8xf32> to vector<4x8x1xf32>
    %18 = vector.broadcast %17 : vector<4x8x1xf32> to vector<4x8x8xf32>
    %19 = arith.subf %15, %18 : vector<4x8x8xf32>
    %20 = math.exp %19 : vector<4x8x8xf32>
    %cst_13 = arith.constant dense<0.000000e+00> : vector<4x8xf32>
    %21 = vector.multi_reduction <add>, %20, %cst_13 [2] : vector<4x8x8xf32> to vector<4x8xf32>
    %22 = vector.shape_cast %21 : vector<4x8xf32> to vector<4x8x1xf32>
    %23 = tpu.reciprocal %22 {approx = true} : vector<4x8x1xf32> -> vector<4x8x1xf32>
    %24 = vector.broadcast %23 : vector<4x8x1xf32> to vector<4x8x8xf32>
    %25 = arith.mulf %20, %24 : vector<4x8x8xf32>
    %26 = arith.truncf %25 : vector<4x8x8xf32> to vector<4x8x8xbf16>
    "tpu.trace_start"() <{level = 10 : i32, message = "hqk,hkd->hqd"}> : () -> ()
    %cst_14 = arith.constant dense<0.000000e+00> : vector<4x8x8xf32>
    %27 = tpu.matmul %26, %3, %cst_14 {dimension_numbers = #tpu.dot_dimension_numbers<[2], [1], [1], [2], [0, 0, 0, 1, 1, 2], [0], [0]>} : vector<4x8x8xbf16>, vector<4x8x8xbf16>, vector<4x8x8xf32> -> vector<4x8x8xf32>
    "tpu.trace_stop"() : () -> ()
    %28 = arith.truncf %27 : vector<4x8x8xf32> to vector<4x8x8xbf16>
    %c0_15 = arith.constant 0 : index
    %c0_16 = arith.constant 0 : index
    %c0_17 = arith.constant 0 : index
    %29 = vector.load %arg6[%c0_15, %c0_16, %c0_17] : memref<4x8x32xbf16, #tpu.memory_space<vmem>>, vector<4x8x32xbf16>
    "tpu.trace_start"() <{level = 10 : i32, message = "hqd,hde->hqe"}> : () -> ()
    %cst_18 = arith.constant dense<0.000000e+00> : vector<4x8x32xf32>
    %30 = tpu.matmul %28, %29, %cst_18 {dimension_numbers = #tpu.dot_dimension_numbers<[2], [1], [1], [2], [0, 0, 0, 1, 1, 2], [0], [0]>} : vector<4x8x8xbf16>, vector<4x8x32xbf16>, vector<4x8x32xf32> -> vector<4x8x32xf32>
    "tpu.trace_stop"() : () -> ()
    %cst_19 = arith.constant dense<0.000000e+00> : vector<8x32xf32>
    %31 = vector.multi_reduction <add>, %30, %cst_19 [0] : vector<4x8x32xf32> to vector<8x32xf32>
    %c0_20 = arith.constant 0 : index
    %c0_21 = arith.constant 0 : index
    %32 = vector.load %arg7[%c0_20, %c0_21] : memref<1x32xf32, #tpu.memory_space<vmem>>, vector<1x32xf32>
    %33 = vector.shape_cast %32 : vector<1x32xf32> to vector<32xf32>
    %34 = vector.shape_cast %33 : vector<32xf32> to vector<1x32xf32>
    %35 = vector.broadcast %34 : vector<1x32xf32> to vector<8x32xf32>
    %36 = arith.addf %31, %35 : vector<8x32xf32>
    %c0_22 = arith.constant 0 : index
    %c0_23 = arith.constant 0 : index
    %c0_24 = arith.constant 0 : index
    %37 = vector.load %arg4[%c0_22, %c0_23, %c0_24] : memref<1x8x32xf32, #tpu.memory_space<vmem>>, vector<1x8x32xf32>
    %38 = vector.shape_cast %37 : vector<1x8x32xf32> to vector<8x32xf32>
    %39 = arith.addf %36, %38 : vector<8x32xf32>
    %cst_25 = arith.constant dense<0.000000e+00> : vector<8xf32>
    %40 = vector.multi_reduction <add>, %39, %cst_25 [1] : vector<8x32xf32> to vector<8xf32>
    %41 = vector.shape_cast %40 : vector<8xf32> to vector<8x1xf32>
    %cst_26 = arith.constant 3.200000e+01 : f32
    %42 = vector.broadcast %cst_26 : f32 to vector<8x1xf32>
    %43 = arith.divf %41, %42 : vector<8x1xf32>
    %44 = vector.broadcast %43 : vector<8x1xf32> to vector<8x32xf32>
    %45 = arith.subf %39, %44 : vector<8x32xf32>
    %46 = arith.mulf %45, %45 : vector<8x32xf32>
    %cst_27 = arith.constant dense<0.000000e+00> : vector<8xf32>
    %47 = vector.multi_reduction <add>, %46, %cst_27 [1] : vector<8x32xf32> to vector<8xf32>
    %48 = vector.shape_cast %47 : vector<8xf32> to vector<8x1xf32>
    %cst_28 = arith.constant 3.200000e+01 : f32
    %49 = vector.broadcast %cst_28 : f32 to vector<8x1xf32>
    %50 = arith.divf %48, %49 : vector<8x1xf32>
    %51 = vector.broadcast %43 : vector<8x1xf32> to vector<8x32xf32>
    %52 = arith.subf %39, %51 : vector<8x32xf32>
    %cst_29 = arith.constant 9.99999974E-6 : f32
    %53 = vector.broadcast %cst_29 : f32 to vector<8x1xf32>
    %54 = arith.addf %50, %53 : vector<8x1xf32>
    %55 = math.rsqrt %54 : vector<8x1xf32>
    %56 = vector.broadcast %55 : vector<8x1xf32> to vector<8x32xf32>
    %57 = arith.mulf %52, %56 : vector<8x32xf32>
    %c0_30 = arith.constant 0 : index
    %c0_31 = arith.constant 0 : index
    %58 = vector.load %arg8[%c0_30, %c0_31] : memref<1x32xf32, #tpu.memory_space<vmem>>, vector<1x32xf32>
    %59 = vector.shape_cast %58 : vector<1x32xf32> to vector<32xf32>
    %60 = vector.shape_cast %59 : vector<32xf32> to vector<1x32xf32>
    %61 = vector.broadcast %60 : vector<1x32xf32> to vector<8x32xf32>
    %62 = arith.mulf %57, %61 : vector<8x32xf32>
    %c0_32 = arith.constant 0 : index
    %c0_33 = arith.constant 0 : index
    %63 = vector.load %arg9[%c0_32, %c0_33] : memref<1x32xf32, #tpu.memory_space<vmem>>, vector<1x32xf32>
    %64 = vector.shape_cast %63 : vector<1x32xf32> to vector<32xf32>
    %65 = vector.shape_cast %64 : vector<32xf32> to vector<1x32xf32>
    %66 = vector.broadcast %65 : vector<1x32xf32> to vector<8x32xf32>
    %67 = arith.addf %62, %66 : vector<8x32xf32>
    %68 = arith.truncf %67 : vector<8x32xf32> to vector<8x32xbf16>
    %c0_34 = arith.constant 0 : index
    %c0_35 = arith.constant 0 : index
    %69 = vector.load %arg10[%c0_34, %c0_35] : memref<32x128xbf16, #tpu.memory_space<vmem>>, vector<32x128xbf16>
    %cst_36 = arith.constant dense<0.000000e+00> : vector<8x128xf32>
    %70 = tpu.matmul %68, %69, %cst_36 {dimension_numbers = #tpu.dot_dimension_numbers<[1], [0], [0], [1], [0, 0, 1, 1], [], []>} : vector<8x32xbf16>, vector<32x128xbf16>, vector<8x128xf32> -> vector<8x128xf32>
    %c0_37 = arith.constant 0 : index
    %c0_38 = arith.constant 0 : index
    %71 = vector.load %arg11[%c0_37, %c0_38] : memref<1x128xf32, #tpu.memory_space<vmem>>, vector<1x128xf32>
    %72 = vector.shape_cast %71 : vector<1x128xf32> to vector<128xf32>
    %73 = vector.shape_cast %72 : vector<128xf32> to vector<1x128xf32>
    %74 = vector.broadcast %73 : vector<1x128xf32> to vector<8x128xf32>
    %75 = arith.addf %70, %74 : vector<8x128xf32>
    %cst_39 = arith.constant 0.000000e+00 : f32
    %76 = vector.broadcast %cst_39 : f32 to vector<8x128xf32>
    %77 = arith.maximumf %75, %76 : vector<8x128xf32>
    %78 = arith.truncf %77 : vector<8x128xf32> to vector<8x128xbf16>
    %c0_40 = arith.constant 0 : index
    %c0_41 = arith.constant 0 : index
    %79 = vector.load %arg12[%c0_40, %c0_41] : memref<128x32xbf16, #tpu.memory_space<vmem>>, vector<128x32xbf16>
    %cst_42 = arith.constant dense<0.000000e+00> : vector<8x32xf32>
    %80 = tpu.matmul %78, %79, %cst_42 {dimension_numbers = #tpu.dot_dimension_numbers<[1], [0], [0], [1], [0, 0, 1, 1], [], []>} : vector<8x128xbf16>, vector<128x32xbf16>, vector<8x32xf32> -> vector<8x32xf32>
    %c0_43 = arith.constant 0 : index
    %c0_44 = arith.constant 0 : index
    %81 = vector.load %arg13[%c0_43, %c0_44] : memref<1x32xf32, #tpu.memory_space<vmem>>, vector<1x32xf32>
    %82 = vector.shape_cast %81 : vector<1x32xf32> to vector<32xf32>
    %83 = vector.shape_cast %82 : vector<32xf32> to vector<1x32xf32>
    %84 = vector.broadcast %83 : vector<1x32xf32> to vector<8x32xf32>
    %85 = arith.addf %80, %84 : vector<8x32xf32>
    %86 = arith.addf %85, %67 : vector<8x32xf32>
    %cst_45 = arith.constant dense<0.000000e+00> : vector<8xf32>
    %87 = vector.multi_reduction <add>, %86, %cst_45 [1] : vector<8x32xf32> to vector<8xf32>
    %88 = vector.shape_cast %87 : vector<8xf32> to vector<8x1xf32>
    %cst_46 = arith.constant 3.200000e+01 : f32
    %89 = vector.broadcast %cst_46 : f32 to vector<8x1xf32>
    %90 = arith.divf %88, %89 : vector<8x1xf32>
    %91 = vector.broadcast %90 : vector<8x1xf32> to vector<8x32xf32>
    %92 = arith.subf %86, %91 : vector<8x32xf32>
    %93 = arith.mulf %92, %92 : vector<8x32xf32>
    %cst_47 = arith.constant dense<0.000000e+00> : vector<8xf32>
    %94 = vector.multi_reduction <add>, %93, %cst_47 [1] : vector<8x32xf32> to vector<8xf32>
    %95 = vector.shape_cast %94 : vector<8xf32> to vector<8x1xf32>
    %cst_48 = arith.constant 3.200000e+01 : f32
    %96 = vector.broadcast %cst_48 : f32 to vector<8x1xf32>
    %97 = arith.divf %95, %96 : vector<8x1xf32>
    %98 = vector.broadcast %90 : vector<8x1xf32> to vector<8x32xf32>
    %99 = arith.subf %86, %98 : vector<8x32xf32>
    %cst_49 = arith.constant 9.99999974E-6 : f32
    %100 = vector.broadcast %cst_49 : f32 to vector<8x1xf32>
    %101 = arith.addf %97, %100 : vector<8x1xf32>
    %102 = math.rsqrt %101 : vector<8x1xf32>
    %103 = vector.broadcast %102 : vector<8x1xf32> to vector<8x32xf32>
    %104 = arith.mulf %99, %103 : vector<8x32xf32>
    %c0_50 = arith.constant 0 : index
    %c0_51 = arith.constant 0 : index
    %105 = vector.load %arg14[%c0_50, %c0_51] : memref<1x32xf32, #tpu.memory_space<vmem>>, vector<1x32xf32>
    %106 = vector.shape_cast %105 : vector<1x32xf32> to vector<32xf32>
    %107 = vector.shape_cast %106 : vector<32xf32> to vector<1x32xf32>
    %108 = vector.broadcast %107 : vector<1x32xf32> to vector<8x32xf32>
    %109 = arith.mulf %104, %108 : vector<8x32xf32>
    %c0_52 = arith.constant 0 : index
    %c0_53 = arith.constant 0 : index
    %110 = vector.load %arg15[%c0_52, %c0_53] : memref<1x32xf32, #tpu.memory_space<vmem>>, vector<1x32xf32>
    %111 = vector.shape_cast %110 : vector<1x32xf32> to vector<32xf32>
    %112 = vector.shape_cast %111 : vector<32xf32> to vector<1x32xf32>
    %113 = vector.broadcast %112 : vector<1x32xf32> to vector<8x32xf32>
    %114 = arith.addf %109, %113 : vector<8x32xf32>
    %c0_54 = arith.constant 0 : index
    %c0_55 = arith.constant 0 : index
    %c0_56 = arith.constant 0 : index
    %115 = vector.load %arg16[%c0_54, %c0_55, %c0_56] : memref<1x8x32xf32, #tpu.memory_space<vmem>>, vector<1x8x32xf32>
    %116 = vector.shape_cast %115 : vector<1x8x32xf32> to vector<8x32xf32>
    %117 = vector.shape_cast %114 : vector<8x32xf32> to vector<1x8x32xf32>
    tpu.vector_store %arg16[%c0_54, %c0_55, %c0_56], %117 {strides = array<i32>} : memref<1x8x32xf32, #tpu.memory_space<vmem>>, vector<1x8x32xf32>,
    return
  }
  func.func @transform_0(%arg0: i32, %arg1: i32) -> (i32, i32, i32, i32) {
    %c0_i32 = arith.constant 0 : i32
    %c0_i32_0 = arith.constant 0 : i32
    %c0_i32_1 = arith.constant 0 : i32
    return %arg0, %c0_i32, %arg1, %c0_i32_0 : i32, i32, i32, i32
  }
  func.func @transform_1(%arg0: i32, %arg1: i32) -> (i32, i32, i32, i32) {
    %c0_i32 = arith.constant 0 : i32
    %c0_i32_0 = arith.constant 0 : i32
    %c0_i32_1 = arith.constant 0 : i32
    %c0_i32_2 = arith.constant 0 : i32
    return %arg0, %c0_i32, %c0_i32_0, %c0_i32_1 : i32, i32, i32, i32
  }
  func.func @transform_2(%arg0: i32, %arg1: i32) -> (i32, i32, i32) {
    %c0_i32 = arith.constant 0 : i32
    %c0_i32_0 = arith.constant 0 : i32
    return %arg0, %arg1, %c0_i32 : i32, i32, i32
  }
  func.func @transform_3(%arg0: i32, %arg1: i32) -> (i32, i32, i32) {
    %c0_i32 = arith.constant 0 : i32
    %c0_i32_0 = arith.constant 0 : i32
    return %arg0, %arg1, %c0_i32 : i32, i32, i32
  }
  func.func @transform_4(%arg0: i32, %arg1: i32) -> (i32, i32, i32) {
    %c0_i32 = arith.constant 0 : i32
    %c0_i32_0 = arith.constant 0 : i32
    %c0_i32_1 = arith.constant 0 : i32
    %c0_i32_2 = arith.constant 0 : i32
    return %c0_i32, %c0_i32_0, %c0_i32_1 : i32, i32, i32
  }
  func.func @transform_5(%arg0: i32, %arg1: i32) -> (i32, i32) {
    %c0_i32 = arith.constant 0 : i32
    %c0_i32_0 = arith.constant 0 : i32
    %c0_i32_1 = arith.constant 0 : i32
    return %c0_i32, %c0_i32_0 : i32, i32
  }
  func.func @transform_6(%arg0: i32, %arg1: i32) -> (i32, i32) {
    %c0_i32 = arith.constant 0 : i32
    %c0_i32_0 = arith.constant 0 : i32
    %c0_i32_1 = arith.constant 0 : i32
    return %c0_i32, %c0_i32_0 : i32, i32
  }
  func.func @transform_7(%arg0: i32, %arg1: i32) -> (i32, i32) {
    %c0_i32 = arith.constant 0 : i32
    %c0_i32_0 = arith.constant 0 : i32
    %c0_i32_1 = arith.constant 0 : i32
    return %c0_i32, %c0_i32_0 : i32, i32
  }
  func.func @transform_8(%arg0: i32, %arg1: i32) -> (i32, i32) {
    %c0_i32 = arith.constant 0 : i32
    %c0_i32_0 = arith.constant 0 : i32
    %c0_i32_1 = arith.constant 0 : i32
    return %c0_i32, %c0_i32_0 : i32, i32
  }
  func.func @transform_9(%arg0: i32, %arg1: i32) -> (i32, i32) {
    %c0_i32 = arith.constant 0 : i32
    %c0_i32_0 = arith.constant 0 : i32
    %c0_i32_1 = arith.constant 0 : i32
    return %c0_i32, %c0_i32_0 : i32, i32
  }
  func.func @transform_10(%arg0: i32, %arg1: i32) -> (i32, i32) {
    %c0_i32 = arith.constant 0 : i32
    %c0_i32_0 = arith.constant 0 : i32
    %c0_i32_1 = arith.constant 0 : i32
    return %c0_i32, %c0_i32_0 : i32, i32
  }
  func.func @transform_11(%arg0: i32, %arg1: i32) -> (i32, i32) {
    %c0_i32 = arith.constant 0 : i32
    %c0_i32_0 = arith.constant 0 : i32
    %c0_i32_1 = arith.constant 0 : i32
    return %c0_i32, %c0_i32_0 : i32, i32
  }
  func.func @transform_12(%arg0: i32, %arg1: i32) -> (i32, i32) {
    %c0_i32 = arith.constant 0 : i32
    %c0_i32_0 = arith.constant 0 : i32
    %c0_i32_1 = arith.constant 0 : i32
    return %c0_i32, %c0_i32_0 : i32, i32
  }
  func.func @transform_13(%arg0: i32, %arg1: i32) -> (i32, i32) {
    %c0_i32 = arith.constant 0 : i32
    %c0_i32_0 = arith.constant 0 : i32
    %c0_i32_1 = arith.constant 0 : i32
    return %c0_i32, %c0_i32_0 : i32, i32
  }
  func.func @transform_14(%arg0: i32, %arg1: i32) -> (i32, i32, i32) {
    %c0_i32 = arith.constant 0 : i32
    %c0_i32_0 = arith.constant 0 : i32
    return %arg0, %arg1, %c0_i32 : i32, i32, i32
  }
}

</mosaic_0001>

<bundles_post_ra>
// kernel: tpu_custom_call.1
= control target key start
LH: loop header
LB: loop body
LE: loop exit
PB: predicated region body
PF: predicated region fallthrough
CT: control target
= control target key end

     0   :  { %s2529_s0 = inlined_call_operand.vmem [shape: bf16[2,4,8,8], index: 0, kind: input, shape index: {}]   ;;  %s2530_s1 = inlined_call_operand.vmem [shape: bf16[2,4,8,8], index: 1, kind: input, shape index: {}]   ;;  %s2531_s2 = inlined_call_operand.vmem [shape: f32[2,8,32], index: 2, kind: input, shape index: {}]   ;;  %s2532_s3 = inlined_call_operand.vmem [shape: s8[2,8,8], index: 3, kind: input, shape index: {}]   ;;  %s2533_s4 = inlined_call_operand.hbm [shape: bf16[4,8,32], index: 4, kind: input, shape index: {}]   ;;  %s2534_s5 = inlined_call_operand.vmem [shape: f32[1,32], index: 5, kind: input, shape index: {}]   ;;  %s2535_s6 = inlined_call_operand.vmem [shape: f32[1,32], index: 6, kind: input, shape index: {}]   ;;  %s2536_s7 = inlined_call_operand.vmem [shape: f32[1,32], index: 7, kind: input, shape index: {}]   ;;  %s2537_s8 = inlined_call_operand.hbm [shape: bf16[32,128], index: 8, kind: input, shape index: {}]   ;;  %s2538_s9 = inlined_call_operand.vmem [shape: f32[1,128], index: 9, kind: input, shape index: {}]   ;;  %s2539_s10 = inlined_call_operand.vmem [shape: bf16[128,32], index: 10, kind: input, shape index: {}]   ;;  %s2540_s11 = inlined_call_operand.vmem [shape: f32[1,32], index: 11, kind: input, shape index: {}]   ;;  %s2541_s12 = inlined_call_operand.vmem [shape: f32[1,32], index: 12, kind: input, shape index: {}]   ;;  %s2542_s13 = inlined_call_operand.vmem [shape: f32[1,32], index: 13, kind: input, shape index: {}]   ;;  %s2543_s14 = inlined_call_operand.hbm [shape: f32[2,8,32], index: 14, kind: output, shape index: {}]  }
   0x1   :  { %2556 = sst [smem:[#allocation18_spill]] %s2541_s12 }
   0x2   :  { %2557 = sst [smem:[#allocation19_spill]] %s2542_s13 }
   0x3   :  { %2558 = sst [smem:[#allocation20_spill]] %s2543_s14 }
   0x4   :  { %19 = vsyncpa [#allocation3], 0 }
   0x5   :  { %20 = vsyncpa [#allocation6], 0 }
   0x6   :  { %21 = vsyncpa [#allocation4], 0 }
   0x7   :  { %23 = vsyncpa [#allocation4 + $0x1], 0  ;;  %s2167_s29 = smov 0   ;;  %s2169_s30 = smov 0  }
   0x8   :  { %s2171_s15 = smov 0   ;;  %s2173_s16 = smov 0  }
   0x9   :  { %s2175_s17 = smov 0   ;;  %s2177_s18 = smov 0  }
   0xa LB: > { %2559 = sst [smem:[#allocation11_spill]] %s2062_s29  ;;  %s1641_s19 = sadd.s32 4294967295, %s2082_s18   ;;  %s2082_s18 = sphi %s2177_s18, %s29_s18   ;;  %s2078_s17 = sphi %s2175_s17, %s2587_s17   ;;  %s2074_s16 = sphi %s2173_s16, %s2586_s16   ;;  %s2070_s15 = sphi %s2171_s15, %s2585_s15   ;;  %s2066_s30 = sphi %s2169_s30, %s2589_s30   ;;  %s2062_s29 = sphi %s2167_s29, %s2588_s29  }
   0xb   : > { %2560 = sst [smem:[#allocation12_spill]] %s2070_s15  ;;  %s1642_s20 = sadd.s32 4294967294, %s2082_s18  }
   0xc   : > { %2561 = sst [smem:[#allocation13_spill]] %s2078_s17  ;;  %s41_s21 = sadd.s32 1, %s2078_s17 }
   0xd   : > { %2562 = sst [smem:[#allocation14_spill]] %s2082_s18  ;;  %s370_s22 = sadd.s32 1, %s2070_s15 }
   0xe   : > { %p43_p0 = scmp.ge.s32.totalorder %s41_s21, 2  ;;  %p380_p1 = scmp.ne.s32.totalorder %s2070_s15, %s2066_s30 }
   0xf   : > { %p381_p2 = scmp.eq.s32.totalorder %s1641_s19, 1  ;;  %p386_p3 = scmp.ne.s32.totalorder %s2066_s30, %s2062_s29 }
  0x10   : > { %s2591_s21 = smov (%p43_p0, %s41_s21), 0  ;;  %p387_p5 = scmp.eq.s32.totalorder %s1642_s20, 1 }
  0x11   : > { %2563 = sst [smem:[#allocation15_spill]] %s2591_s21  ;;  %p2207_p4 = por %p381_p2, %p380_p1 }
  0x12   : > { %s365_s24 = ssub.s32 %s2078_s17, %s2591_s21  ;;  %p1643_p6 = scmp.ge.s32.totalorder %s2082_s18, 1 }
  0x13   : > { %s2564_s23 = scalar_select %p2207_p4, 1, 0 }
  0x14   : > { %p368_p7 = scmp.eq.s32.totalorder %s365_s24, 0  ;;  %p2214_p8 = por %p387_p5, %p386_p3 }
  0x15   : > { %p394_p9 = scmp.lt.s32.totalorder %s2082_s18, 3  ;;  %p2226_p11 = scmp.eq.s32.totalorder %s1641_s19, 0 }
  0x16   : > { %s2565_s25 = scalar_select %p2214_p8, 1, 0 }
  0x17   : > { %s2220_s26 = scalar_select %p368_p7, %s2070_s15, %s370_s22  }
  0x18   : > { %2566 = sst [smem:[#allocation16_spill]] %s2565_s25  ;;  %p2222_p10 = pnand %p1643_p6, %p394_p9 }
  0x19   : > { %2567 = sst [smem:[#allocation17_spill]] %s2220_s26  ;;  %s2084_s20 = smov [#allocation2]  }
  0x1a   : > { %s2568_s27 = scalar_select %p2222_p10, 1, 0 }
  0x1b   : > { %s2569_s28 = scalar_select %p2226_p11, 1, 0 }
  0x1c   : > { %p1839_p12 = pneg %p2222_p10  ;;  %s406_s24 = sshll.u32 %s2084_s20, 4  ;;  %s407_s24 = int_to_ptr.vmem [resolvable:$true] %s406_s24 }
  0x1d   : > { %s2085_s22 = smov [#allocation5]   ;;  %s1940_s15 = scalar_lea.hbm %s2533_s4, 256 }
  0x1e   : > { %p2234_p13 = pnand %p2226_p11, %p1839_p12  ;;  %s428_s17 = sshll.u32 %s2085_s22, 4  ;;  %s2238_s17 = int_to_ptr.vmem [resolvable:$true] %s428_s17 }
  0x1f   : > { %p1941_p0 = scmp.ne.s32.totalorder %s2533_s4, %s1940_s15  ;;  %p1947_p5 = scmp.lt.u32.totalorder %s1940_s15, %s2533_s4 }
  0x20   : > { %p1942_p1 = pneg %p2234_p13 }
  0x22   : > { %p1943_p2 = pnand %p1942_p1, %p1941_p0 }
  0x24   : > { %p1944_p3 = pneg %p1943_p2 }
  0x26   : > { %p1949_p6 = pnand %p1947_p5, %p1944_p3 }
  0x28   : > { %1952 = shalt.err (!%p1949_p6)
}
  0x29   : > { %s1953_s22 = scalar_lea.vmem %s407_s24, 256  ;;  %p1961_p8 = scmp.lt.s32.totalorder %s407_s24, %s407_s24 }
  0x2a   : > { %p1954_p7 = scmp.ne.s32.totalorder %s407_s24, %s1953_s22  ;;  %p1962_p4 = scmp.lt.s32.totalorder %s1953_s22, %s1953_s22 }
  0x2c   : > { %p1956_p9 = pnand %p1954_p7, %p1942_p1  ;;  %p1963_p11 = por %p1962_p4, %p1961_p8 }
  0x2e   : > { %p1957_p12 = pneg %p1956_p9 }
  0x30   : > { %p1964_p10 = pnand %p1963_p11, %p1957_p12 }
  0x32   : > { %1967 = shalt.err (!%p1964_p10)
}
  0x33   : > { %s2086_s29 = smov 64   ;;  %s2087_s25 = smov 4  }
  0x34   : > { %1842 = dma.hbm_to_vmem [thread:$0]  (!%p2234_p13), %s2533_s4, 256, %s407_s24, [#allocation3], %s2086_s29, %s2086_s29, %s2087_s25  }
  0x35   : > { %s1968_s20 = scalar_lea.hbm %s2537_s8, 256 }
  0x36   : > { %p1969_p0 = scmp.ne.s32.totalorder %s2537_s8, %s1968_s20  ;;  %p1975_p10 = scmp.lt.u32.totalorder %s1968_s20, %s2537_s8 }
  0x38   : > { %p1971_p4 = pnand %p1969_p0, %p1942_p1 }
  0x3a   : > { %p1972_p8 = pneg %p1971_p4 }
  0x3c   : > { %p1977_p11 = pnand %p1975_p10, %p1972_p8 }
  0x3e   : > { %1980 = shalt.err (!%p1977_p11)
}
  0x3f   : > { %s1981_s24 = scalar_lea.vmem %s2238_s17, 256  ;;  %p1989_p6 = scmp.lt.s32.totalorder %s2238_s17, %s2238_s17 }
  0x40   : > { %p1982_p2 = scmp.ne.s32.totalorder %s2238_s17, %s1981_s24  ;;  %p1990_p7 = scmp.lt.s32.totalorder %s1981_s24, %s1981_s24 }
  0x42   : > { %p1984_p3 = pnand %p1982_p2, %p1942_p1  ;;  %p1991_p9 = por %p1990_p7, %p1989_p6 }
  0x44   : > { %p1985_p5 = pneg %p1984_p3 }
  0x46   : > { %p1992_p12 = pnand %p1991_p9, %p1985_p5 }
  0x48   : > { %1995 = shalt.err (!%p1992_p12)
}
  0x49   : > { %1845 = dma.hbm_to_vmem [thread:$0]  (!%p2234_p13), %s2537_s8, 256, %s2238_s17, [#allocation6], %s2086_s29, %s2086_s29, %s2087_s25  }
  0x4a   : > { %p2571_p0 = scmp.ne.s32.totalorder %s2568_s27, 0 }
  0x4b   : > { %p2572_p4 = scmp.ne.s32.totalorder (!%p2571_p0), %s2569_s28, 0 }
  0x4c   : > { %498 = sbr.rel (%p2571_p0) target bundleno = 2161 (0x871), region = 76 }
  0x53   : > { %2049 = dma.done.wait (%p2572_p4), [#allocation3], 256  }
  0x54   : > { %2051 = vsyncadd (%p2572_p4), [#allocation3], 4294967040 }
  0x55   : > { %2053 = dma.done.wait (%p2572_p4), [#allocation6], 256  }
  0x56   : > { %2055 = vsyncadd (%p2572_p4), [#allocation6], 4294967040  ;;  %p570_p1 = scmp.lt.s32.totalorder %s2074_s16, 1  ;;  %v2088_v0 = vmov 0.0   ;;  %vm2089_vm0 = vmmov 0   ;;  %vm610_vm1 = vcmask 64512  }
  0x57   : > { %1729 = vmatprep.subr.bf16.mxu0 %v2088_v0  ;;  %1747 = vmatprep.subr.bf16.mxu1 %v2088_v0  ;;  %vm859_vm2 = vcmask 1043456   ;;  %v2090_v15 = vmov 0   ;;  %vm1229_vm5 = vcmask 261120   ;;  %s567_s19 = sand.u32 1, %s2066_s30   ;;  %s2575_s12 = sld [smem:[#allocation18_spill]] }
  0x58   : > { %s2301_s14 = scalar_select %p570_p1, %s2074_s16, 1  ;;  %1731 = vmatprep.mubr.msk.bf16.mxu0 %vm2089_vm0, %v2088_v0  ;;  %1749 = vmatprep.mubr.msk.bf16.mxu1 %vm2089_vm0, %v2088_v0 }
  0x59   : > { %s2576_s21 = sld [smem:[#allocation19_spill]]  ;;  %p2579_p8 = scmp.ne.s32.totalorder %s2564_s23, 0 }
  0x5a   : > { %s1691_s17 = sshll.u32 %s2301_s14, 4  ;;  %s1656_s18 = sshll.u32 %s2301_s14, 1 }
  0x5b   : > { %s582_s28 = scalar_lea.vmem %s2530_s1, %s1691_s17  ;;  %s577_s15 = scalar_lea.vmem %s2529_s0, %s1691_s17 }
  0x5c   : > { %v604_v1 = vld [vmem:[%s582_s28] sm:$0xf]  ;;  %v2315_v3 = vld [vmem:[%s582_s28 + $0x4] sm:$0xf]  ;;  %v2317_v4 = vld [vmem:[%s582_s28 + $0xc] sm:$0xf]  ;;  %s596_s20 = scalar_lea.vmem %s2532_s3, %s1656_s18 }
  0x5d   : > { %v615_v2 = vsel %vm610_vm1, %v604_v1, 0  ;;  %v753_v5 = vsel %vm610_vm1, %v2317_v4, 0  ;;  %v600_v6 = vld [vmem:[%s577_s15] sm:$0xf]  ;;  %v661_v7 = vsel %vm610_vm1, %v2315_v3, 0  ;;  %v860_v13 = vsel %vm859_vm2, %v604_v1, 0 }
  0x5e   : > { %1730 = vmatpush3.bf16.xpose.msra.mxu0 %v615_v2  ;;  %1748 = vmatpush3.bf16.xpose.msra.mxu1 %v753_v5  ;;  %v603_v8 = vld [vmem:[%s577_s15 + $0xc] sm:$0xf]  ;;  %v2330_v9 = vld [vmem:[%s582_s28 + $0x8] sm:$0xf]  ;;  %v601_v10 = vld [vmem:[%s577_s15 + $0x4] sm:$0xf] }
  0x5f   : > { %1735 = vmatprep.subr.bf16.mxu0 %v2088_v0  ;;  %1759 = vmatprep.subr.bf16.mxu1 %v2088_v0  ;;  %v707_v11 = vsel %vm610_vm1, %v2330_v9, 0  ;;  %v602_v12 = vld [vmem:[%s577_s15 + $0x8] sm:$0xf]  ;;  %v608_v14 = vld [vmem:[%s596_s20] sm:$0x3]  ;;  %s1655_s22 = sshll.u32 %s2301_s14, 3 }
  0x60   : > { %vm609_vm3 = vnez %v608_v14  ;;  %s589_s13 = scalar_lea.vmem %s2531_s2, %s1655_s22  ;;  %s1650_s20 = sshll.u32 %s567_s19, 3 }
  0x61   : > { %v795_v16 = vsel %vm609_vm3, 16843009, %v2090_v15  ;;  %s1688_s14 = sshll.u32 %s2074_s16, 7  ;;  %s569_s27 = scalar_lea.vmem [#allocation7], %s1650_s20 }
  0x62   : > { %v796_v17 = vunpack.c.0.s8 %v795_v16  ;;  %s1503_s28 = sshll.u32 %s569_s27, 4  ;;  %s2577_s15 = sld [smem:[#allocation20_spill]]  ;;  %s2483_s28 = int_to_ptr.vmem [resolvable:$true] %s1503_s28 }
  0x63   : > { %s1489_s22 = scalar_lea.sflag [#allocation4], %s567_s19  ;;  %s1996_s24 = scalar_lea.vmem %s2483_s28, 128 }
  0x64   : > { %vm2349_vm4 = vcmp.ne.s32.totalorder %v796_v17, 0  ;;  %v995_v17 = vsel %vm859_vm2, %v2317_v4, 0  ;;  %p1997_p13 = scmp.ne.s32.totalorder %s2483_s28, %s1996_s24  ;;  %s2091_s16 = smov [#allocation7]  }
  0x65   : > { %1732 = vmatmul.mubr.msk.bf16.vlgmr.msra.gmra.mrb[0].mxu0 %vm610_vm1, %v600_v6  ;;  %1750 = vmatmul.mubr.msk.bf16.vlgmr.msra.gmra.mrb[0].mxu1 %vm610_vm1, %v603_v8  ;;  %v905_v6 = vsel %vm859_vm2, %v2315_v3, 0  ;;  %s2000_s20 = sshll.u32 %s2091_s16, 4  ;;  %s2001_s20 = int_to_ptr.vmem [resolvable:$false] %s2000_s20 }
  0x66   : > { %1736 = vmatpush3.bf16.xpose.msra.mxu0 %v661_v7  ;;  %1737 = vmatprep.mubr.msk.bf16.mxu0 %vm2089_vm0, %v2088_v0  ;;  %p1998_p10 = pnand %p1997_p13, %p2579_p8  ;;  %p2003_p2 = scmp.lt.s32.totalorder %s2483_s28, %s2001_s20 }
  0x67   : > { %1741 = vmatprep.subr.bf16.mxu0 %v2088_v0  ;;  %1761 = vmatprep.mubr.msk.bf16.mxu1 %vm2089_vm0, %v2088_v0 }
  0x68   : > { %1760 = vmatpush3.bf16.msra.mxu1 %v905_v6  ;;  %s2578_s26 = smov %s2577_s15  ;;  %s2481_s18 = scalar_lea.hbm %s2577_s15, %s1688_s14 }
  0x69   : > { %1771 = vmatprep.subr.bf16.mxu1 %v2088_v0  ;;  %p1999_p11 = pneg %p1998_p10 }
  0x6d   : > { %1738 = vmatmul.mubr.msk.bf16.vlgmr.msra.gmra.mrb[4].mxu0 %vm610_vm1, %v601_v10 }
  0x6e   : > { %1742 = vmatpush3.bf16.xpose.msra.mxu0 %v707_v11  ;;  %1743 = vmatprep.mubr.msk.bf16.mxu0 %vm2089_vm0, %v2088_v0 }
  0x6f   : > { %1753 = vmatprep.subr.bf16.mxu0 %v2088_v0 }
  0x75   : > { %1744 = vmatmul.mubr.msk.bf16.vlgmr.msra.gmra.mrb[8].mxu0 %vm610_vm1, %v602_v12 }
  0x76   : > { %1754 = vmatpush3.bf16.msra.mxu0 %v860_v13  ;;  %1755 = vmatprep.mubr.msk.bf16.mxu0 %vm2089_vm0, %v2088_v0  ;;  %v950_v13 = vsel %vm859_vm2, %v2330_v9, 0 }
  0x77   : > { %1765 = vmatprep.subr.bf16.mxu0 %v2088_v0 }
 0x138   : > { %v651_v19 = vpop.f32.mrb[0].mxu0  ;;  %v789_v24 = vpop.f32.mrb[0].mxu1 }
 0x139   : > { %v800_v20 = vsel %vm2349_vm4, -1e+20, %v651_v19  ;;  %v1733_v21 = vpop.f32.mrb[1].mxu0  ;;  %v1751_v26 = vpop.f32.mrb[1].mxu1  ;;  %v803_v37 = vsel %vm2349_vm4, -1e+20, %v789_v24 }
 0x13a   : > { %v804_v22 = vmul.f32 0.17677669, %v800_v20  ;;  %v654_v23 = vpop.f32.mrb[2].mxu0  ;;  %v792_v28 = vpop.f32.mrb[2].mxu1  ;;  %v807_v43 = vmul.f32 0.17677669, %v803_v37 }
 0x13b   : > { %v1734_v25 = vpop.f32.mrb[3].mxu0  ;;  %v1752_v29 = vpop.f32.mrb[3].mxu1  ;;  %v1041_v23 = vld [vmem:[#allocation2] sm:$0xf] }
 0x13c   : > { %v808_v27 = vsel %vm610_vm1, %v804_v22, -inf  ;;  %v817_v46 = vsel %vm610_vm1, %v807_v43, -inf  ;;  %v1049_v24 = vsel %vm859_vm2, %v1041_v23, 0  ;;  %v1042_v25 = vld [vmem:[#allocation2 + $0x4] sm:$0xf] }
 0x13d   : > { %809 = vmax.xlane.f32.xlu0 %v808_v27  ;;  %v1095_v26 = vsel %vm859_vm2, %v1042_v25, 0  ;;  %v1043_v27 = vld [vmem:[#allocation2 + $0x8] sm:$0xf]  ;;  %v1912_v23 = vld [vmem:[%s2539_s10] sm:$0xff]   ;;  %v1914_v25 = vld [vmem:[%s2539_s10 + $0x10] sm:$0xff]  }
 0x140   : > { %v697_v30 = vpop.f32.mrb[4].mxu0 }
 0x141   : > { %v801_v31 = vsel %vm2349_vm4, -1e+20, %v697_v30  ;;  %v1739_v32 = vpop.f32.mrb[5].mxu0 }
 0x142   : > { %v805_v33 = vmul.f32 0.17677669, %v801_v31  ;;  %v700_v34 = vpop.f32.mrb[6].mxu0  ;;  %v1141_v31 = vsel %vm859_vm2, %v1043_v27, 0  ;;  %v1916_v27 = vld [vmem:[%s2539_s10 + $0x20] sm:$0xff]  }
 0x143   : > { %v1740_v35 = vpop.f32.mrb[7].mxu0  ;;  %v1044_v34 = vld [vmem:[#allocation2 + $0xc] sm:$0xf] }
 0x144   : > { %v811_v36 = vsel %vm610_vm1, %v805_v33, -inf }
 0x145   : > { %812 = vmax.xlane.f32.xlu0 %v811_v36 }
 0x148   : > { %v743_v38 = vpop.f32.mrb[8].mxu0 }
 0x149   : > { %v802_v39 = vsel %vm2349_vm4, -1e+20, %v743_v38  ;;  %v1745_v40 = vpop.f32.mrb[9].mxu0  ;;  %v1187_v38 = vsel %vm859_vm2, %v1044_v34, 0 }
 0x14a   : > { %v806_v41 = vmul.f32 0.17677669, %v802_v39  ;;  %v746_v42 = vpop.f32.mrb[10].mxu0 }
 0x14b   : > { %v1746_v44 = vpop.f32.mrb[11].mxu0 }
 0x14c   : > { %v814_v45 = vsel %vm610_vm1, %v806_v41, -inf }
 0x14d   : > { %815 = vmax.xlane.f32.xlu1 %v814_v45 }
 0x151   : > { %818 = vmax.xlane.f32.xlu1 %v817_v46 }
 0x1ca   : > { %v810_v47 = vpop.xlane.xlu0 %809 }
 0x1cb   : > { %v820_v48 = vsub.f32 %v804_v22, %v810_v47 }
 0x1cd   : > { %v824_v49 = vmul.f32 1.442695, %v820_v48 }
 0x1cf   : > { %1920 = vpow2.f32 %v824_v49 }
 0x1d2   : > { %v813_v50 = vpop.xlane.xlu0 %812 }
 0x1d3   : > { %v821_v51 = vsub.f32 %v805_v33, %v813_v50 }
 0x1d5   : > { %v826_v52 = vmul.f32 1.442695, %v821_v51 }
 0x1d7   : > { %1922 = vpow2.f32 %v826_v52 }
 0x1d9   : > { %v1921_v53 = vpop.eup %1920 }
 0x1da   : > { %v816_v54 = vpop.xlane.xlu1 %815  ;;  %v832_v55 = vsel %vm610_vm1, %v1921_v53, 0.0 }
 0x1db   : > { %v822_v56 = vsub.f32 %v806_v41, %v816_v54  ;;  %833 = vadd.xlane.f32.xlu0 %v832_v55 }
 0x1dd   : > { %v828_v57 = vmul.f32 1.442695, %v822_v56 }
 0x1de   : > { %v819_v58 = vpop.xlane.xlu1 %818 }
 0x1df   : > { %1924 = vpow2.f32 %v828_v57  ;;  %v823_v59 = vsub.f32 %v807_v43, %v819_v58 }
 0x1e1   : > { %v1923_v60 = vpop.eup %1922  ;;  %v830_v61 = vmul.f32 1.442695, %v823_v59 }
 0x1e2   : > { %v835_v62 = vsel %vm610_vm1, %v1923_v60, 0.0 }
 0x1e3   : > { %1926 = vpow2.f32 %v830_v61  ;;  %836 = vadd.xlane.f32.xlu1 %v835_v62 }
 0x1e9   : > { %v1925_v63 = vpop.eup %1924 }
 0x1ea   : > { %v838_v1 = vsel %vm610_vm1, %v1925_v63, 0.0 }
 0x1eb   : > { %839 = vadd.xlane.f32.xlu0 %v838_v1 }
 0x1ed   : > { %v1927_v2 = vpop.eup %1926 }
 0x1ee   : > { %v841_v5 = vsel %vm610_vm1, %v1927_v2, 0.0 }
 0x1ef   : > { %842 = vadd.xlane.f32.xlu1 %v841_v5 }
 0x268   : > { %v834_v7 = vpop.xlane.xlu0 %833 }
 0x269   : > { %1928 = vrcp.f32 %v834_v7 }
 0x270   : > { %v837_v8 = vpop.xlane.xlu1 %836 }
 0x271   : > { %1930 = vrcp.f32 %v837_v8 }
 0x273   : > { %v1929_v10 = vpop.eup %1928 }
 0x274   : > { %v848_v11 = vmul.f32 %v1929_v10, %v1921_v53  ;;  %v1669_v10 = vld [vmem:[%s2534_s5] ss:$0 sm:$0xff] }
 0x276   : > { %v852_v12 = vpack.c.bf16 %v848_v11, %v848_v11 }
 0x278   : > { %1756 = vmatmul.mubr.msk.bf16.vlgmr.msra.gmra.mrb[12].mxu0 %vm610_vm1, %v852_v12  ;;  %v840_v14 = vpop.xlane.xlu0 %839 }
 0x279   : > { %1932 = vrcp.f32 %v840_v14  ;;  %1766 = vmatpush3.bf16.msra.mxu0 %v950_v13  ;;  %1767 = vmatprep.mubr.msk.bf16.mxu0 %vm2089_vm0, %v2088_v0 }
 0x27a   : > { %1777 = vmatprep.subr.bf16.mxu0 %v2088_v0 }
 0x27b   : > { %v1931_v3 = vpop.eup %1930 }
 0x27c   : > { %v849_v15 = vmul.f32 %v1931_v3, %v1923_v60  ;;  %v843_v16 = vpop.xlane.xlu1 %842  ;;  %v1245_v3 = vld [vmem:[%s589_s13] sm:$0xff] }
 0x27d   : > { %1934 = vrcp.f32 %v843_v16 }
 0x27e   : > { %v853_v18 = vpack.c.bf16 %v849_v15, %v849_v15 }
 0x280   : > { %1762 = vmatmul.mubr.msk.bf16.vlgmr.msra.gmra.mrb[4].mxu1 %vm610_vm1, %v853_v18 }
 0x281   : > { %1772 = vmatpush3.bf16.msra.mxu1 %v995_v17  ;;  %1773 = vmatprep.mubr.msk.bf16.mxu1 %vm2089_vm0, %v2088_v0 }
 0x282   : > { %1783 = vmatprep.subr.bf16.mxu1 %v2088_v0 }
 0x283   : > { %v1933_v9 = vpop.eup %1932 }
 0x284   : > { %v850_v19 = vmul.f32 %v1933_v9, %v1925_v63 }
 0x286   : > { %v854_v20 = vpack.c.bf16 %v850_v19, %v850_v19 }
 0x287   : > { %v1935_v21 = vpop.eup %1934 }
 0x288   : > { %v851_v22 = vmul.f32 %v1935_v21, %v1927_v2  ;;  %1768 = vmatmul.mubr.msk.bf16.vlgmr.msra.gmra.mrb[16].mxu0 %vm610_vm1, %v854_v20 }
 0x289   : > { %1779 = vmatprep.mubr.msk.bf16.mxu0 %vm2089_vm0, %v2088_v0  ;;  %1778 = vmatpush3.bf16.msra.mxu0 %v1049_v24  ;;  %v1913_v24 = vld [vmem:[%s2539_s10 + $0x8] sm:$0xff]  }
 0x28a   : > { %v855_v4 = vpack.c.bf16 %v851_v22, %v851_v22  ;;  %1789 = vmatprep.subr.bf16.mxu0 %v2088_v0  ;;  %v1910_v22 = vld [vmem:[#allocation5] sm:$0xff]  }
 0x28c   : > { %1774 = vmatmul.mubr.msk.bf16.vlgmr.msra.gmra.mrb[8].mxu1 %vm610_vm1, %v855_v4  ;;  %v1911_v4 = vld [vmem:[#allocation5 + $0x8] sm:$0xff]  }
 0x28d   : > { %1785 = vmatprep.mubr.msk.bf16.mxu1 %vm2089_vm0, %v2088_v0  ;;  %1784 = vmatpush3.bf16.msra.mxu1 %v1095_v26  ;;  %v1915_v26 = vld [vmem:[%s2539_s10 + $0x18] sm:$0xff]  }
 0x28e   : > { %1795 = vmatprep.subr.bf16.mxu1 %v2088_v0 }
 0x34b   : > { %v896_v28 = vpop.f32.mrb[12].mxu0 }
 0x34c   : > { %v1037_v29 = vpack.c.bf16 %v896_v28, %v896_v28  ;;  %v1757_v30 = vpop.f32.mrb[13].mxu0  ;;  %v1917_v28 = vld [vmem:[%s2539_s10 + $0x28] sm:$0xff]  }
 0x34d   : > { %v899_v32 = vpop.f32.mrb[14].mxu0 }
 0x34e   : > { %v1758_v33 = vpop.f32.mrb[15].mxu0  ;;  %1780 = vmatmul.mubr.msk.bf16.vlgmr.msra.gmra.mrb[20].mxu0 %vm610_vm1, %v1037_v29 }
 0x34f   : > { %1790 = vmatpush3.bf16.msra.mxu0 %v1141_v31  ;;  %1791 = vmatprep.mubr.msk.bf16.mxu0 %vm2089_vm0, %v2088_v0  ;;  %v1670_v33 = vld [vmem:[%s2535_s6] ss:$0 sm:$0xff] }
 0x350   : > { %1801 = vmatprep.subr.bf16.mxu0 %v2088_v0 }
 0x353   : > { %v941_v35 = vpop.f32.mrb[4].mxu1 }
 0x354   : > { %v1038_v36 = vpack.c.bf16 %v941_v35, %v941_v35  ;;  %v1763_v37 = vpop.f32.mrb[5].mxu1  ;;  %v1671_v35 = vld [vmem:[%s2536_s7] ss:$0 sm:$0xff] }
 0x355   : > { %v944_v39 = vpop.f32.mrb[6].mxu1 }
 0x356   : > { %v1764_v40 = vpop.f32.mrb[7].mxu1  ;;  %1786 = vmatmul.mubr.msk.bf16.vlgmr.msra.gmra.mrb[12].mxu1 %vm610_vm1, %v1038_v36  ;;  %v1918_v39 = vld [vmem:[%s2539_s10 + $0x30] sm:$0xff]  }
 0x357   : > { %1796 = vmatpush3.bf16.msra.mxu1 %v1187_v38  ;;  %1797 = vmatprep.mubr.msk.bf16.mxu1 %vm2089_vm0, %v2088_v0  ;;  %v1919_v40 = vld [vmem:[%s2539_s10 + $0x38] sm:$0xff]  }
 0x358   : > { %1809 = vmatprep.subr.bf16.mxu1 %v2088_v0 }
 0x35b   : > { %v986_v41 = vpop.f32.mrb[16].mxu0 }
 0x35c   : > { %v1039_v42 = vpack.c.bf16 %v986_v41, %v986_v41  ;;  %v1769_v43 = vpop.f32.mrb[17].mxu0  ;;  %v1672_v41 = vld [vmem:[%s2538_s9] ss:$0 sm:$0xff] }
 0x35d   : > { %v989_v44 = vpop.f32.mrb[18].mxu0 }
 0x35e   : > { %v1770_v45 = vpop.f32.mrb[19].mxu0  ;;  %1792 = vmatmul.mubr.msk.bf16.vlgmr.msra.gmra.mrb[24].mxu0 %vm610_vm1, %v1039_v42 }
 0x35f   : > { %v1031_v46 = vpop.f32.mrb[8].mxu1  ;;  %1805 = vmatprep.mubr.msk.bf16.mxu0 %vm2089_vm0, %v2088_v0  ;;  %1802 = vmatpush3.bf16.msra.mxu0 %v1910_v22 }
 0x360   : > { %v1040_v47 = vpack.c.bf16 %v1031_v46, %v1031_v46  ;;  %v1775_v48 = vpop.f32.mrb[9].mxu1  ;;  %1803 = vmatprep.subr.bf16.mxu0 %v2088_v0 }
 0x361   : > { %v1034_v49 = vpop.f32.mrb[10].mxu1 }
 0x362   : > { %v1776_v50 = vpop.f32.mrb[11].mxu1  ;;  %1798 = vmatmul.mubr.msk.bf16.vlgmr.msra.gmra.mrb[16].mxu1 %vm610_vm1, %v1040_v47 }
 0x363   : > { %1825 = vmatprep.mubr.msk.bf16.mxu1 %vm2089_vm0, %v2088_v0  ;;  %1804 = vmatpush3.bf16.msra.mxu0 %v1911_v4 }
 0x364   : > { %1810 = vmatpush3.bf16.msra.mxu1 %v1912_v23 }
 0x365   : > { %1811 = vmatprep.subr.bf16.mxu1 %v2088_v0 }
 0x368   : > { %1812 = vmatpush3.bf16.msra.mxu1 %v1913_v24 }
 0x369   : > { %1813 = vmatprep.subr.bf16.mxu1 %v2088_v0 }
 0x36c   : > { %1814 = vmatpush3.bf16.msra.mxu1 %v1914_v25 }
 0x36d   : > { %1815 = vmatprep.subr.bf16.mxu1 %v2088_v0 }
 0x370   : > { %1816 = vmatpush3.bf16.msra.mxu1 %v1915_v26 }
 0x371   : > { %1817 = vmatprep.subr.bf16.mxu1 %v2088_v0 }
 0x374   : > { %1818 = vmatpush3.bf16.msra.mxu1 %v1916_v27 }
 0x375   : > { %1819 = vmatprep.subr.bf16.mxu1 %v2088_v0 }
 0x378   : > { %1820 = vmatpush3.bf16.msra.mxu1 %v1917_v28 }
 0x379   : > { %1821 = vmatprep.subr.bf16.mxu1 %v2088_v0 }
 0x37c   : > { %1822 = vmatpush3.bf16.msra.mxu1 %v1918_v39 }
 0x37d   : > { %1823 = vmatprep.subr.bf16.mxu1 %v2088_v0  ;;  %v1676_v0 = vld [vmem:[%s2540_s11] ss:$0 sm:$0xff] }
 0x380   : > { %1824 = vmatpush3.bf16.msra.mxu1 %v1919_v40 }
 0x421   : > { %v1085_v51 = vpop.f32.mrb[20].mxu0 }
 0x422   : > { %v1781_v52 = vpop.f32.mrb[21].mxu0  ;;  %v1230_v56 = vsel %vm1229_vm5, %v1085_v51, 0.0 }
 0x423   : > { %v1088_v53 = vpop.f32.mrb[22].mxu0 }
 0x424   : > { %v1782_v54 = vpop.f32.mrb[23].mxu0 }
 0x429   : > { %v1131_v55 = vpop.f32.mrb[12].mxu1 }
 0x42a   : > { %v1231_v57 = vsel %vm1229_vm5, %v1131_v55, 0.0  ;;  %v1787_v58 = vpop.f32.mrb[13].mxu1 }
 0x42b   : > { %v1232_v59 = vadd.f32 %v1231_v57, %v1230_v56  ;;  %v1134_v60 = vpop.f32.mrb[14].mxu1 }
 0x42c   : > { %v1788_v61 = vpop.f32.mrb[15].mxu1 }
 0x431   : > { %v1177_v62 = vpop.f32.mrb[24].mxu0 }
 0x432   : > { %v1233_v63 = vsel %vm1229_vm5, %v1177_v62, 0.0  ;;  %v1793_v1 = vpop.f32.mrb[25].mxu0 }
 0x433   : > { %v1234_v2 = vadd.f32 %v1233_v63, %v1232_v59  ;;  %v1180_v5 = vpop.f32.mrb[26].mxu0 }
 0x434   : > { %v1794_v6 = vpop.f32.mrb[27].mxu0 }
 0x435   : > { %v1223_v7 = vpop.f32.mrb[16].mxu1  ;;  %v1686_v6 = vld [vmem:[%s2576_s21] ss:$0 sm:$0xff] }
 0x436   : > { %v1235_v8 = vsel %vm1229_vm5, %v1223_v7, 0.0  ;;  %v1799_v11 = vpop.f32.mrb[17].mxu1 }
 0x437   : > { %v1236_v12 = vadd.f32 %v1235_v8, %v1234_v2  ;;  %v1226_v13 = vpop.f32.mrb[18].mxu1  ;;  %v1685_v2 = vld [vmem:[%s2575_s12] ss:$0 sm:$0xff]  ;;  %s2002_s12 = scalar_lea.vmem %s2001_s20, 256 }
 0x438   : > { %v1800_v14 = vpop.f32.mrb[19].mxu1  ;;  %p2004_p3 = scmp.lt.s32.totalorder %s2002_s12, %s1996_s24 }
 0x439   : > { %v1244_v15 = vadd.f32 %v1669_v10, %v1236_v12 }
 0x43a   : > { %p2005_p5 = por %p2004_p3, %p2003_p2 }
 0x43b   : > { %v1246_v16 = vadd.f32 %v1245_v3, %v1244_v15 }
 0x43c   : > { %p2006_p6 = pnand %p2005_p5, %p1999_p11 }
 0x43d   : > { %v1247_v17 = vsel %vm1229_vm5, %v1246_v16, 0.0 }
 0x43e   : > { %1248 = vadd.xlane.f32.xlu0 %v1247_v17 }
 0x4cb   : > { %v1249_v18 = vpop.xlane.xlu0 %1248 }
 0x4cc   : > { %v1251_v9 = vmul.f32 0.03125, %v1249_v18 }
 0x4ce   : > { %v1252_v19 = vsub.f32 %v1246_v16, %v1251_v9 }
 0x4d0   : > { %v1253_v20 = vmul.f32 %v1252_v19, %v1252_v19 }
 0x4d2   : > { %v1254_v21 = vsel %vm1229_vm5, %v1253_v20, 0.0 }
 0x4d3   : > { %1255 = vadd.xlane.f32.xlu1 %v1254_v21 }
 0x560   : > { %v1256_v29 = vpop.xlane.xlu1 %1255 }
 0x561   : > { %v1257_v30 = vmul.f32 0.03125, %v1256_v29 }
 0x563   : > { %v1258_v31 = vadd.f32 1e-05, %v1257_v30 }
 0x565   : > { %1936 = vrsqrt.f32 %v1258_v31 }
 0x56f   : > { %v1937_v32 = vpop.eup %1936 }
 0x570   : > { %v1260_v34 = vmul.f32 %v1937_v32, %v1252_v19 }
 0x572   : > { %v1268_v36 = vmul.f32 %v1670_v33, %v1260_v34 }
 0x574   : > { %v1276_v37 = vadd.f32 %v1671_v35, %v1268_v36 }
 0x576   : > { %v1277_v38 = vpack.c.bf16 %v1276_v37, %v1276_v37 }
 0x578   : > { %1806 = vmatmul.mubr.msk.bf16.vlgmr.msra.gmra.mrb[28].mxu0 %vm1229_vm5, %v1277_v38 }
 0x64b   : > { %v1338_v42 = vpop.f32.mrb[28].mxu0 }
 0x64c   : > { %v1339_v43 = vadd.f32 %v1672_v41, %v1338_v42  ;;  %v1807_v44 = vpop.f32.mrb[29].mxu0 }
 0x64d   : > { %v1341_v45 = vpop.f32.mrb[30].mxu0 }
 0x64e   : > { %v1344_v46 = vmax.f32 %v1339_v43, 0.0  ;;  %v1808_v47 = vpop.f32.mrb[31].mxu0 }
 0x650   : > { %v1345_v48 = vpack.c.bf16 %v1344_v46, %v1344_v46 }
 0x652   : > { %1826 = vmatmul.mubr.bf16.vlgmr.msra.gmra.mrb[20].mxu1 %v1345_v48 }
 0x725   : > { %v1451_v49 = vpop.f32.mrb[20].mxu1 }
 0x726   : > { %v1452_v50 = vadd.f32 %v1676_v0, %v1451_v49  ;;  %v1827_v51 = vpop.f32.mrb[21].mxu1 }
 0x727   : > { %v1454_v52 = vpop.f32.mrb[22].mxu1 }
 0x728   : > { %v1828_v53 = vpop.f32.mrb[23].mxu1  ;;  %v1457_v54 = vadd.f32 %v1452_v50, %v1276_v37 }
 0x72a   : > { %v1458_v55 = vsel %vm1229_vm5, %v1457_v54, 0.0 }
 0x72b   : > { %1459 = vadd.xlane.f32.xlu0 %v1458_v55 }
 0x7b8   : > { %v1460_v56 = vpop.xlane.xlu0 %1459 }
 0x7b9   : > { %v1461_v57 = vmul.f32 0.03125, %v1460_v56 }
 0x7bb   : > { %v1462_v58 = vsub.f32 %v1457_v54, %v1461_v57 }
 0x7bd   : > { %v1463_v59 = vmul.f32 %v1462_v58, %v1462_v58 }
 0x7bf   : > { %v1464_v60 = vsel %vm1229_vm5, %v1463_v59, 0.0 }
 0x7c0   : > { %1465 = vadd.xlane.f32.xlu1 %v1464_v60 }
 0x84d   : > { %v1466_v61 = vpop.xlane.xlu1 %1465 }
 0x84e   : > { %v1467_v62 = vmul.f32 0.03125, %v1466_v61 }
 0x850   : > { %v1468_v63 = vadd.f32 1e-05, %v1467_v62 }
 0x852   : > { %1938 = vrsqrt.f32 %v1468_v63 }
 0x85c   : > { %v1939_v1 = vpop.eup %1938 }
 0x85d   : > { %v1470_v5 = vmul.f32 %v1939_v1, %v1462_v58 }
 0x85f   : > { %v1478_v7 = vmul.f32 %v1685_v2, %v1470_v5 }
 0x861   : > { %v1486_v8 = vadd.f32 %v1686_v6, %v1478_v7 }
 0x863   : > { %1487 = vst.msk [vmem:[%s569_s27] sm:$0xff] %vm1229_vm5, %v1486_v8 }
 0x864   : > { %2009 = shalt.err (!%p2006_p6)
}
 0x865   : > { %s2010_s19 = scalar_lea.hbm %s2481_s18, 128  ;;  %s2014_s21 = scalar_lea.hbm %s2578_s26, 256 }
 0x866   : > { %p2011_p7 = scmp.ne.s32.totalorder %s2481_s18, %s2010_s19  ;;  %p2015_p0 = scmp.lt.u32.totalorder %s2481_s18, %s2578_s26 }
 0x867   : > { %p2016_p4 = scmp.lt.u32.totalorder %s2014_s21, %s2010_s19  ;;  %p2018_p13 = scmp.lt.u32.totalorder %s2010_s19, %s2481_s18 }
 0x868   : > { %p2012_p9 = pnand %p2011_p7, %p2579_p8 }
 0x869   : > { %p2017_p1 = por %p2016_p4, %p2015_p0 }
 0x86a   : > { %p2013_p12 = pneg %p2012_p9 }
 0x86b   : > { %p2019_p10 = por %p2018_p13, %p2017_p1 }
 0x86d   : > { %p2020_p11 = pnand %p2019_p10, %p2013_p12 }
 0x86f   : > { %2023 = shalt.err (!%p2020_p11)
}
 0x870   : > { %1837 = dma.vmem_to_hbm [thread:$0]  (%p2579_p8), %s2483_s28, 128, %s2481_s18, %s1489_s22  }
 0x871 PF: > { %s2580_s29 = sld [smem:[#allocation14_spill]]  ;;  %s2581_s25 = sld [smem:[#allocation11_spill]] }
 0x872   : > { %s2582_s15 = sld [smem:[#allocation16_spill]] }
 0x877   : > { %p1854_p2 = scmp.ge.s32.totalorder %s2580_s29, 2  ;;  %s1515_s24 = sand.u32 1, %s2581_s25  }
 0x878   : > { %p2583_p3 = scmp.ne.s32.totalorder %s2582_s15, 0  ;;  %s1516_s16 = scalar_lea.sflag [#allocation4], %s1515_s24 }
 0x87a   : > { %p1847_p5 = pnand %p1854_p2, %p2583_p3 }
 0x87c   : > { %2057 = dma.done.wait (!%p1847_p5), %s1516_s16, 128  }
 0x87d   : > { %2059 = vsyncadd (!%p1847_p5), %s1516_s16, 4294967168  ;;  %s29_s18 = sadd.s32 1, %s2580_s29   ;;  %s2584_s20 = sld [smem:[#allocation12_spill]] }
 0x87e   : > { %p26_p6 = scmp.ge.s32.totalorder %s29_s18, 4   ;;  %s2585_s15 = sld [smem:[#allocation17_spill]] }
 0x87f   : > { %s2586_s16 = sld [smem:[#allocation13_spill]]  ;;  %s2587_s17 = sld [smem:[#allocation15_spill]] }
 0x880   : > { %s2588_s29 = smov %s2066_s30  ;;  %28 = sbr.rel (!%p26_p6) target bundleno = 10 (0xa), region = 129 }
 0x883   : > { %s2589_s30 = smov %s2584_s20 }
 0x887   :  { %1521 = vsyncpa [#allocation3], 1 }
 0x888   :  { %1523 = vsyncpa [#allocation3 + $0x1], 1 }
 0x889   :  { %1524 = vsyncpa [#allocation6], 1 }
 0x88a   :  { %1525 = vsyncpa [#allocation4], 1 }
 0x88b   :  { %1527 = vsyncpa [#allocation4 + $0x1], 1 }

</bundles_post_ra>
